<compile_context>
chip_gen: v6e
topology: v6e:2x2x1
jax: 0.10.0
libtpu: 0.0.40
codegen_flags: <defaults>
</compile_context>

<pallas_src>
import math

import jax
import jax.numpy as jnp
from jax import lax
from jax.experimental import pallas as pl
from jax.experimental.pallas import tpu as pltpu


# ----------------------------------------------------------------------------
# Host-side helpers
# ----------------------------------------------------------------------------

def _fold_phase_weights(w):
    """w: (1, C, 3, 3) PyTorch OIHW conv weight (Cout == 1) -> (16, C) f32.

    Row index t = pr*8 + pc*4 + a*2 + b for phase (pr, pc) and 2x2 tap (a, b).
    """
    w = w[0]                                                  # (C, 3, 3)
    C = w.shape[0]
    # Combine rows: wr[pr, a, c, col]
    wr = jnp.stack([
        jnp.stack([w[:, 0, :], w[:, 1, :] + w[:, 2, :]], axis=0),   # pr = 0
        jnp.stack([w[:, 0, :] + w[:, 1, :], w[:, 2, :]], axis=0),   # pr = 1
    ], axis=0)                                                # (2, 2, C, 3)
    # Combine cols: wp[pr, pc, a, c, b]
    wc0 = jnp.stack([wr[..., 0], wr[..., 1] + wr[..., 2]], axis=-1)  # pc = 0
    wc1 = jnp.stack([wr[..., 0] + wr[..., 1], wr[..., 2]], axis=-1)  # pc = 1
    wp = jnp.stack([wc0, wc1], axis=1)                        # (2, 2, 2, C, 2)
    wp = jnp.transpose(wp, (0, 1, 2, 4, 3))                   # [pr, pc, a, b, c]
    return wp.reshape(16, C).astype(jnp.float32)


def _edge_masks(H, W):
    """(4, H*W) f32 keep-masks on the flattened (i*W + j) axis.

    Rows: [row != 0, row != H-1, col != 0, col != W-1]; used for source-row /
    source-col offsets of -1/+1 respectively.
    """
    row = jnp.repeat(jnp.arange(H, dtype=jnp.int32), W)
    col = jnp.tile(jnp.arange(W, dtype=jnp.int32), H)
    return jnp.stack(
        [row != 0, row != H - 1, col != 0, col != W - 1], axis=0
    ).astype(jnp.float32)


def _pick_channel_chunk(C, HW, itemsize, budget_bytes):
    """Largest channel chunk whose double-buffered input block fits the budget."""
    per_channel = 2 * HW * itemsize                           # double buffered
    max_tc = max(1, int(budget_bytes // per_channel))
    if C <= max_tc:
        return C
    best = 0
    tc = 8                                                    # sublane-tiling friendly
    while tc <= max_tc:
        if C % tc == 0:
            best = tc
        tc += 8
    # TODO(synk): if even TC=8 does not fit (huge H*W), spatial row blocking
    # with halo DMA is required; fall back to the full-C block for now.
    return best if best else C


# ----------------------------------------------------------------------------
# Pallas kernel
# ----------------------------------------------------------------------------

def _make_kernel(H, W, n_chunks):
    HW = H * W

    def kernel(x_ref, wp_ref, m_ref, b_ref, o_ref, *scratch):
        # x_ref : (1, TC, HW)  VMEM  flattened-spatial channel chunk (lane-dense)
        # wp_ref: (1, 16, TC)  VMEM  folded phase-tap weights for this chunk
        # m_ref : (4, HW)      VMEM  edge keep-masks
        # b_ref : (1,)         SMEM  conv bias (num_classes == 1)
        # o_ref : (1, 4, HW)   VMEM  phase planes (resident across chunks)
        # scratch[0] (only if n_chunks > 1): (16, HW) f32 tap-plane accumulator
        cc = pl.program_id(1)

        # Channel contraction on the MXU: Y[t, :] = sum_c Wfold[t, c] * x[c, :]
        y = jnp.dot(wp_ref[0], x_ref[0],
                    preferred_element_type=jnp.float32,
                    precision=lax.Precision.HIGHEST)          # (16, HW) f32

        if n_chunks > 1:
            y_acc = scratch[0]

            @pl.when(cc == 0)
            def _init():
                y_acc[...] = y

            @pl.when(cc > 0)
            def _accum():
                y_acc[...] = y_acc[...] + y

        def finalize():
            yf = y if n_chunks == 1 else scratch[0][...]      # (16, HW) f32
            # Hoisted edge masks (applied as 0/1 multipliers).
            m_top = m_ref[0:1, :]                             # src row offset -1
            m_bot = m_ref[1:2, :]                             # src row offset +1
            m_lft = m_ref[2:3, :]                             # src col offset -1
            m_rgt = m_ref[3:4, :]                             # src col offset +1
            bias = jnp.zeros((1, HW), jnp.float32) + b_ref[0]

            for pr in (0, 1):
                for pc in (0, 1):
                    p = pr * 2 + pc
                    acc = bias                                # vreg accumulator
                    for a in (0, 1):
                        r = a - 1 + pr                        # source row offset
                        for tb in (0, 1):
                            s = tb - 1 + pc                   # source col offset
                            t = p * 4 + a * 2 + tb
                            v = yf[t:t + 1, :]                # (1, HW)
                            k = (-(r * W + s)) % HW           # flat-axis shift
                            if k:
                                v = pltpu.roll(v, shift=k, axis=1)
                            if r == -1:
                                v = v * m_top
                            elif r == 1:
                                v = v * m_bot
                            if s == -1:
                                v = v * m_lft
                            elif s == 1:
                                v = v * m_rgt
                            acc = acc + v
                    # One lane-dense store per phase plane.
                    o_ref[0, p:p + 1, :] = acc.astype(o_ref.dtype)

        if n_chunks == 1:
            finalize()
        else:
            pl.when(cc == n_chunks - 1)(finalize)

    return kernel


# ----------------------------------------------------------------------------
# Wrapper
# ----------------------------------------------------------------------------

def final_head_forward(x, w, b):
    """Fused Upsample(2x, nearest) + Conv2d(C->1, 3x3, pad=1, bias).

    x: (B, C, H, W) NCHW (f32 or bf16); w: (1, C, 3, 3) OIHW; b: (1,).
    Returns (B, 1, 2H, 2W) in x.dtype.
    """
    B, C, H, W = x.shape
    HW = H * W
    dtype = x.dtype
    itemsize = jnp.dtype(dtype).itemsize

    TC = _pick_channel_chunk(C, HW, itemsize, budget_bytes=16 * 1024 * 1024)
    n_chunks = C // TC

    wp = _fold_phase_weights(w)                               # (16, C) f32
    wp_chunks = wp.reshape(16, n_chunks, TC).transpose(1, 0, 2).astype(dtype)
    masks = _edge_masks(H, W)                                 # (4, HW) f32
    x_flat = x.reshape(B, C, HW)                              # free metadata reshape

    scratch = []
    if n_chunks > 1:
        scratch.append(pltpu.VMEM((16, HW), jnp.float32))

    phases = pl.pallas_call(
        _make_kernel(H, W, n_chunks),
        out_shape=jax.ShapeDtypeStruct((B, 4, HW), dtype),
        grid=(B, n_chunks),
        in_specs=[
            pl.BlockSpec((1, TC, HW), lambda bi, ci: (bi, ci, 0)),
            pl.BlockSpec((1, 16, TC), lambda bi, ci: (ci, 0, 0)),
            pl.BlockSpec((4, HW), lambda bi, ci: (0, 0)),
            pl.BlockSpec(memory_space=pltpu.MemorySpace.SMEM),   # bias
        ],
        out_specs=pl.BlockSpec((1, 4, HW), lambda bi, ci: (bi, 0, 0)),
        scratch_shapes=tuple(scratch),
        compiler_params=pltpu.CompilerParams(
            dimension_semantics=("parallel", "arbitrary"),
            vmem_limit_bytes=40 * 1024 * 1024),
    )(x_flat, wp_chunks, masks, b.astype(jnp.float32))

    # Phase interleave: out[n, 0, 2i+pr, 2j+pc] = phases[n, 2*pr+pc, i*W+j].
    # TODO(synk): fuse this interleave into the kernel to drop this small
    # post-kernel HBM round trip.
    out = phases.reshape(B, 2, 2, H, W).transpose(0, 3, 1, 4, 2)
    return out.reshape(B, 1, 2 * H, 2 * W)


# ----------------------------------------------------------------------------
# Pure-JAX reference (validation only)
# ----------------------------------------------------------------------------

def _reference_final_head(x, w, b):
    xu = jnp.repeat(jnp.repeat(x, 2, axis=2), 2, axis=3)      # nearest 2x, NCHW
    y = jax.lax.conv_general_dilated(
        xu, w, window_strides=(1, 1), padding=((1, 1), (1, 1)),
        dimension_numbers=("NCHW", "OIHW", "NCHW"))
    return y + b.reshape(1, -1, 1, 1)


# ----------------------------------------------------------------------------

if __name__ == "__main__":
    key = jax.random.PRNGKey(0)
    B, C, H, W = 2, 64, 16, 16          # base_channel=64, num_classes=1

    kx, kw, kb = jax.random.split(key, 3)
    x = jax.random.normal(kx, (B, C, H, W), jnp.float32)

    # PyTorch Conv2d default init: U(-1/sqrt(fan_in), +1/sqrt(fan_in)), OIHW.
    fan_in = C * 9
    bound = 1.0 / math.sqrt(fan_in)
    w = jax.random.uniform(kw, (1, C, 3, 3), jnp.float32, -bound, bound)
    b = jax.random.uniform(kb, (1,), jnp.float32, -bound, bound)

    fwd = jax.jit(final_head_forward)
    out = jax.block_until_ready(fwd(x, w, b))
    assert out.shape == (B, 1, 2 * H, 2 * W), out.shape
    assert bool(jnp.all(jnp.isfinite(out)))

    ref = _reference_final_head(x, w, b)
    # Tolerance covers MXU f32 rounding; a wrong shift/mask/weight would be
    # orders of magnitude larger.
    err = float(jnp.max(jnp.abs(out - ref)))
    assert err < 2e-3, f"max abs error vs reference: {err}"

    print("KERNEL_OK")
</pallas_src>

<mosaic_0001>
module attributes {stable_mosaic.version = 11 : i64} {
  func.func @kernel(%arg0: i32, %arg1: i32, %arg2: memref<1x64x256xf32, #tpu.memory_space<vmem>>, %arg3: memref<1x16x64xf32, #tpu.memory_space<vmem>>, %arg4: memref<4x256xf32, #tpu.memory_space<vmem>>, %arg5: memref<1xf32, #tpu.memory_space<smem>>, %arg6: memref<1x4x256xf32, #tpu.memory_space<vmem>>) attributes {dimension_semantics = [#tpu.dimension_semantics<parallel>, #tpu.dimension_semantics<arbitrary>], iteration_bounds = array<i64: 2, 1>, scalar_prefetch = 0 : i64, scratch_operands = 0 : i64, tpu.core_type = #tpu.core_type<tc>, window_params = [{transform_indices = @transform_0, window_bounds = array<i64: 1, 64, 256>}, {transform_indices = @transform_1, window_bounds = array<i64: 1, 16, 64>}, {pipeline_mode = #tpu.pipeline_mode<synchronous>, transform_indices = @transform_2, window_bounds = array<i64: 4, 256>}, {transform_indices = @transform_3, window_bounds = array<i64: 1>}, {transform_indices = @transform_4, window_bounds = array<i64: 1, 4, 256>}]} {
    %c0 = arith.constant 0 : index
    %c0_0 = arith.constant 0 : index
    %c0_1 = arith.constant 0 : index
    %0 = vector.load %arg3[%c0, %c0_0, %c0_1] : memref<1x16x64xf32, #tpu.memory_space<vmem>>, vector<1x16x64xf32>
    %1 = vector.shape_cast %0 : vector<1x16x64xf32> to vector<16x64xf32>
    %c0_2 = arith.constant 0 : index
    %c0_3 = arith.constant 0 : index
    %c0_4 = arith.constant 0 : index
    %2 = vector.load %arg2[%c0_2, %c0_3, %c0_4] : memref<1x64x256xf32, #tpu.memory_space<vmem>>, vector<1x64x256xf32>
    %3 = vector.shape_cast %2 : vector<1x64x256xf32> to vector<64x256xf32>
    %cst = arith.constant dense<0.000000e+00> : vector<16x256xf32>
    %4 = tpu.matmul %1, %3, %cst {dimension_numbers = #tpu.dot_dimension_numbers<[1], [0], [0], [1], [0, 0, 1, 1], [], []>, precision = #tpu.contract_precision<fp32>} : vector<16x64xf32>, vector<64x256xf32>, vector<16x256xf32> -> vector<16x256xf32>
    %c0_5 = arith.constant 0 : index
    %c0_6 = arith.constant 0 : index
    %5 = vector.load %arg4[%c0_5, %c0_6] : memref<4x256xf32, #tpu.memory_space<vmem>>, vector<1x256xf32>
    %c1 = arith.constant 1 : index
    %c0_7 = arith.constant 0 : index
    %6 = vector.load %arg4[%c1, %c0_7] : memref<4x256xf32, #tpu.memory_space<vmem>>, vector<1x256xf32>
    %c2 = arith.constant 2 : index
    %c0_8 = arith.constant 0 : index
    %7 = vector.load %arg4[%c2, %c0_8] : memref<4x256xf32, #tpu.memory_space<vmem>>, vector<1x256xf32>
    %c3 = arith.constant 3 : index
    %c0_9 = arith.constant 0 : index
    %8 = vector.load %arg4[%c3, %c0_9] : memref<4x256xf32, #tpu.memory_space<vmem>>, vector<1x256xf32>
    %cst_10 = arith.constant 0.000000e+00 : f32
    %9 = vector.broadcast %cst_10 : f32 to vector<1x256xf32>
    %c0_11 = arith.constant 0 : index
    %10 = memref.load %arg5[%c0_11] : memref<1xf32, #tpu.memory_space<smem>>
    %11 = vector.broadcast %10 : f32 to vector<1x256xf32>
    %12 = arith.addf %9, %11 : vector<1x256xf32>
    %13 = vector.extract_strided_slice %4 {offsets = [0, 0], sizes = [1, 256], strides = [1, 1]} : vector<16x256xf32> to vector<1x256xf32>
    %c17_i32 = arith.constant 17 : i32
    %14 = tpu.dynamic_rotate %13 by %c17_i32 dim 1 : vector<1x256xf32>, i32 -> vector<1x256xf32>
    %15 = arith.mulf %14, %5 : vector<1x256xf32>
    %16 = arith.mulf %15, %7 : vector<1x256xf32>
    %17 = arith.addf %12, %16 : vector<1x256xf32>
    %18 = vector.extract_strided_slice %4 {offsets = [1, 0], sizes = [1, 256], strides = [1, 1]} : vector<16x256xf32> to vector<1x256xf32>
    %c16_i32 = arith.constant 16 : i32
    %19 = tpu.dynamic_rotate %18 by %c16_i32 dim 1 : vector<1x256xf32>, i32 -> vector<1x256xf32>
    %20 = arith.mulf %19, %5 : vector<1x256xf32>
    %21 = arith.addf %17, %20 : vector<1x256xf32>
    %22 = vector.extract_strided_slice %4 {offsets = [2, 0], sizes = [1, 256], strides = [1, 1]} : vector<16x256xf32> to vector<1x256xf32>
    %c1_i32 = arith.constant 1 : i32
    %23 = tpu.dynamic_rotate %22 by %c1_i32 dim 1 : vector<1x256xf32>, i32 -> vector<1x256xf32>
    %24 = arith.mulf %23, %7 : vector<1x256xf32>
    %25 = arith.addf %21, %24 : vector<1x256xf32>
    %26 = vector.extract_strided_slice %4 {offsets = [3, 0], sizes = [1, 256], strides = [1, 1]} : vector<16x256xf32> to vector<1x256xf32>
    %27 = arith.addf %25, %26 : vector<1x256xf32>
    %c0_12 = arith.constant 0 : index
    %c0_13 = arith.constant 0 : index
    %c0_14 = arith.constant 0 : index
    %28 = vector.load %arg6[%c0_12, %c0_13, %c0_14] : memref<1x4x256xf32, #tpu.memory_space<vmem>>, vector<1x1x256xf32>
    %29 = vector.shape_cast %28 : vector<1x1x256xf32> to vector<1x256xf32>
    %30 = vector.shape_cast %27 : vector<1x256xf32> to vector<1x1x256xf32>
    tpu.vector_store %arg6[%c0_12, %c0_13, %c0_14], %30 {strides = array<i32>} : memref<1x4x256xf32, #tpu.memory_space<vmem>>, vector<1x1x256xf32>,
    %31 = vector.extract_strided_slice %4 {offsets = [4, 0], sizes = [1, 256], strides = [1, 1]} : vector<16x256xf32> to vector<1x256xf32>
    %c16_i32_15 = arith.constant 16 : i32
    %32 = tpu.dynamic_rotate %31 by %c16_i32_15 dim 1 : vector<1x256xf32>, i32 -> vector<1x256xf32>
    %33 = arith.mulf %32, %5 : vector<1x256xf32>
    %34 = arith.addf %12, %33 : vector<1x256xf32>
    %35 = vector.extract_strided_slice %4 {offsets = [5, 0], sizes = [1, 256], strides = [1, 1]} : vector<16x256xf32> to vector<1x256xf32>
    %c15_i32 = arith.constant 15 : i32
    %36 = tpu.dynamic_rotate %35 by %c15_i32 dim 1 : vector<1x256xf32>, i32 -> vector<1x256xf32>
    %37 = arith.mulf %36, %5 : vector<1x256xf32>
    %38 = arith.mulf %37, %8 : vector<1x256xf32>
    %39 = arith.addf %34, %38 : vector<1x256xf32>
    %40 = vector.extract_strided_slice %4 {offsets = [6, 0], sizes = [1, 256], strides = [1, 1]} : vector<16x256xf32> to vector<1x256xf32>
    %41 = arith.addf %39, %40 : vector<1x256xf32>
    %42 = vector.extract_strided_slice %4 {offsets = [7, 0], sizes = [1, 256], strides = [1, 1]} : vector<16x256xf32> to vector<1x256xf32>
    %c255_i32 = arith.constant 255 : i32
    %43 = tpu.dynamic_rotate %42 by %c255_i32 dim 1 : vector<1x256xf32>, i32 -> vector<1x256xf32>
    %44 = arith.mulf %43, %8 : vector<1x256xf32>
    %45 = arith.addf %41, %44 : vector<1x256xf32>
    %c0_16 = arith.constant 0 : index
    %c1_17 = arith.constant 1 : index
    %c0_18 = arith.constant 0 : index
    %46 = vector.load %arg6[%c0_16, %c1_17, %c0_18] : memref<1x4x256xf32, #tpu.memory_space<vmem>>, vector<1x1x256xf32>
    %47 = vector.shape_cast %46 : vector<1x1x256xf32> to vector<1x256xf32>
    %48 = vector.shape_cast %45 : vector<1x256xf32> to vector<1x1x256xf32>
    tpu.vector_store %arg6[%c0_16, %c1_17, %c0_18], %48 {strides = array<i32>} : memref<1x4x256xf32, #tpu.memory_space<vmem>>, vector<1x1x256xf32>,
    %49 = vector.extract_strided_slice %4 {offsets = [8, 0], sizes = [1, 256], strides = [1, 1]} : vector<16x256xf32> to vector<1x256xf32>
    %c1_i32_19 = arith.constant 1 : i32
    %50 = tpu.dynamic_rotate %49 by %c1_i32_19 dim 1 : vector<1x256xf32>, i32 -> vector<1x256xf32>
    %51 = arith.mulf %50, %7 : vector<1x256xf32>
    %52 = arith.addf %12, %51 : vector<1x256xf32>
    %53 = vector.extract_strided_slice %4 {offsets = [9, 0], sizes = [1, 256], strides = [1, 1]} : vector<16x256xf32> to vector<1x256xf32>
    %54 = arith.addf %52, %53 : vector<1x256xf32>
    %55 = vector.extract_strided_slice %4 {offsets = [10, 0], sizes = [1, 256], strides = [1, 1]} : vector<16x256xf32> to vector<1x256xf32>
    %c241_i32 = arith.constant 241 : i32
    %56 = tpu.dynamic_rotate %55 by %c241_i32 dim 1 : vector<1x256xf32>, i32 -> vector<1x256xf32>
    %57 = arith.mulf %56, %6 : vector<1x256xf32>
    %58 = arith.mulf %57, %7 : vector<1x256xf32>
    %59 = arith.addf %54, %58 : vector<1x256xf32>
    %60 = vector.extract_strided_slice %4 {offsets = [11, 0], sizes = [1, 256], strides = [1, 1]} : vector<16x256xf32> to vector<1x256xf32>
    %c240_i32 = arith.constant 240 : i32
    %61 = tpu.dynamic_rotate %60 by %c240_i32 dim 1 : vector<1x256xf32>, i32 -> vector<1x256xf32>
    %62 = arith.mulf %61, %6 : vector<1x256xf32>
    %63 = arith.addf %59, %62 : vector<1x256xf32>
    %c0_20 = arith.constant 0 : index
    %c2_21 = arith.constant 2 : index
    %c0_22 = arith.constant 0 : index
    %64 = vector.load %arg6[%c0_20, %c2_21, %c0_22] : memref<1x4x256xf32, #tpu.memory_space<vmem>>, vector<1x1x256xf32>
    %65 = vector.shape_cast %64 : vector<1x1x256xf32> to vector<1x256xf32>
    %66 = vector.shape_cast %63 : vector<1x256xf32> to vector<1x1x256xf32>
    tpu.vector_store %arg6[%c0_20, %c2_21, %c0_22], %66 {strides = array<i32>} : memref<1x4x256xf32, #tpu.memory_space<vmem>>, vector<1x1x256xf32>,
    %67 = vector.extract_strided_slice %4 {offsets = [12, 0], sizes = [1, 256], strides = [1, 1]} : vector<16x256xf32> to vector<1x256xf32>
    %68 = arith.addf %12, %67 : vector<1x256xf32>
    %69 = vector.extract_strided_slice %4 {offsets = [13, 0], sizes = [1, 256], strides = [1, 1]} : vector<16x256xf32> to vector<1x256xf32>
    %c255_i32_23 = arith.constant 255 : i32
    %70 = tpu.dynamic_rotate %69 by %c255_i32_23 dim 1 : vector<1x256xf32>, i32 -> vector<1x256xf32>
    %71 = arith.mulf %70, %8 : vector<1x256xf32>
    %72 = arith.addf %68, %71 : vector<1x256xf32>
    %73 = vector.extract_strided_slice %4 {offsets = [14, 0], sizes = [1, 256], strides = [1, 1]} : vector<16x256xf32> to vector<1x256xf32>
    %c240_i32_24 = arith.constant 240 : i32
    %74 = tpu.dynamic_rotate %73 by %c240_i32_24 dim 1 : vector<1x256xf32>, i32 -> vector<1x256xf32>
    %75 = arith.mulf %74, %6 : vector<1x256xf32>
    %76 = arith.addf %72, %75 : vector<1x256xf32>
    %77 = vector.extract_strided_slice %4 {offsets = [15, 0], sizes = [1, 256], strides = [1, 1]} : vector<16x256xf32> to vector<1x256xf32>
    %c239_i32 = arith.constant 239 : i32
    %78 = tpu.dynamic_rotate %77 by %c239_i32 dim 1 : vector<1x256xf32>, i32 -> vector<1x256xf32>
    %79 = arith.mulf %78, %6 : vector<1x256xf32>
    %80 = arith.mulf %79, %8 : vector<1x256xf32>
    %81 = arith.addf %76, %80 : vector<1x256xf32>
    %c0_25 = arith.constant 0 : index
    %c3_26 = arith.constant 3 : index
    %c0_27 = arith.constant 0 : index
    %82 = vector.load %arg6[%c0_25, %c3_26, %c0_27] : memref<1x4x256xf32, #tpu.memory_space<vmem>>, vector<1x1x256xf32>
    %83 = vector.shape_cast %82 : vector<1x1x256xf32> to vector<1x256xf32>
    %84 = vector.shape_cast %81 : vector<1x256xf32> to vector<1x1x256xf32>
    tpu.vector_store %arg6[%c0_25, %c3_26, %c0_27], %84 {strides = array<i32>} : memref<1x4x256xf32, #tpu.memory_space<vmem>>, vector<1x1x256xf32>,
    return
  }
  func.func @transform_0(%arg0: i32, %arg1: i32) -> (i32, i32, i32) {
    %c0_i32 = arith.constant 0 : i32
    %c0_i32_0 = arith.constant 0 : i32
    return %arg0, %arg1, %c0_i32 : i32, i32, i32
  }
  func.func @transform_1(%arg0: i32, %arg1: i32) -> (i32, i32, i32) {
    %c0_i32 = arith.constant 0 : i32
    %c0_i32_0 = arith.constant 0 : i32
    %c0_i32_1 = arith.constant 0 : i32
    return %arg1, %c0_i32, %c0_i32_0 : i32, i32, i32
  }
  func.func @transform_2(%arg0: i32, %arg1: i32) -> (i32, i32) {
    %c0_i32 = arith.constant 0 : i32
    %c0_i32_0 = arith.constant 0 : i32
    %c0_i32_1 = arith.constant 0 : i32
    return %c0_i32, %c0_i32_0 : i32, i32
  }
  func.func @transform_3(%arg0: i32, %arg1: i32) -> i32 {
    %c0_i32 = arith.constant 0 : i32
    %c0_i32_0 = arith.constant 0 : i32
    return %c0_i32 : i32
  }
  func.func @transform_4(%arg0: i32, %arg1: i32) -> (i32, i32, i32) {
    %c0_i32 = arith.constant 0 : i32
    %c0_i32_0 = arith.constant 0 : i32
    %c0_i32_1 = arith.constant 0 : i32
    return %arg0, %c0_i32, %c0_i32_0 : i32, i32, i32
  }
}

</mosaic_0001>

<bundles_post_ra>
// kernel: final_head_forward.1
= control target key start
LH: loop header
LB: loop body
LE: loop exit
PB: predicated region body
PF: predicated region fallthrough
CT: control target
= control target key end

     0   :  { %s1532_s17 = smov 0   ;;  %s1534_s18 = smov 0   ;;  %s2066_s0 = inlined_call_operand.vmem [shape: f32[2,64,256], index: 0, kind: input, shape index: {}]   ;;  %s2067_s1 = inlined_call_operand.vmem [shape: f32[1,16,64], index: 1, kind: input, shape index: {}]   ;;  %s2068_s2 = inlined_call_operand.vmem [shape: f32[4,256], index: 2, kind: input, shape index: {}]   ;;  %s2069_s3 = inlined_call_operand.<no memory space> [shape: f32[1], index: 3, kind: input, shape index: {}]   ;;  %s2070_s4 = inlined_call_operand.vmem [shape: f32[2,4,256], index: 4, kind: output, shape index: {}]  }
   0x1   :  { %9 = sst [smem:[#allocation2]] %s2069_s3  ;;  %s1536_s19 = smov 0  }
   0x2 LB: > { %s27_s3 = sadd.s32 1, %s1488_s18  ;;  %p1421_p0 = scmp.ge.s32.totalorder %s1492_s19, 1  ;;  %s1492_s19 = sphi %s1536_s19, %s15_s19   ;;  %s1488_s18 = sphi %s1534_s18, %s2080_s18   ;;  %s1484_s17 = sphi %s1532_s17, %s2079_s17  }
   0x3   : > { %p29_p1 = scmp.ge.s32.totalorder %s27_s3, 2  ;;  %p193_p2 = scmp.lt.s32.totalorder %s1492_s19, 3 }
   0x5   : > { %s2082_s3 = smov (%p29_p1, %s27_s3), 0  ;;  %p194_p3 = pnand %p1421_p0, %p193_p2 }
   0x6   : > { %p230_p4 = scmp.lt.s32.totalorder (!%p194_p3), %s1484_s17, 1  ;;  %s1495_s28 = smov (!%p194_p3), 17  }
   0x7   : > { %197 = sbr.rel (%p194_p3) target bundleno = 450 (0x1c2), region = 36  ;;  %s1496_s29 = smov (!%p194_p3), 16  }
   0x8   : > { %s1497_s30 = smov (!%p194_p3), 15   ;;  %s1498_s5 = smov (!%p194_p3), 1  }
   0x9   : > { %s1499_s6 = smov (!%p194_p3), 127   ;;  %s1500_s7 = smov (!%p194_p3), 113  }
   0xa   : > { %s1501_s8 = smov (!%p194_p3), 112   ;;  %s1502_s9 = smov (!%p194_p3), 111  }
   0xb   : > { %s978_s14 = sld [smem:[#allocation2]] (!%p194_p3) }
   0xc   : > { %v250_v0 = vld [vmem:[%s2067_s1] sm:$0xff]  ;;  %vm268_vm0 = vcmask 523264   ;;  %v251_v1 = vld [vmem:[%s2067_s1 + $0x8] sm:$0xff]  ;;  %v1494_v2 = vmov 0.0   ;;  %s2084_s17 = smov (!%p230_p4, %s1484_s17), 1 }
   0xd   : > { %355 = vmatprep.mubr.f32.mxu0 %v1494_v2  ;;  %v270_v3 = vsel %vm268_vm0, %v250_v0, 0  ;;  %522 = vmatprep.mubr.f32.mxu1 %v1494_v2  ;;  %v273_v4 = vsel %vm268_vm0, %v251_v1, 0  ;;  %s1434_s24 = sshll.u32 %s2084_s17, 7  ;;  %s1435_s20 = sshll.u32 %s2084_s17, 3 }
   0xe   : > { %v1560_v5 = vand.u32 4294901760, %v270_v3  ;;  %v1562_v6 = vand.u32 4294901760, %v273_v4  ;;  %s1571_s27 = scalar_lea.vmem %s2066_s0, %s1434_s24  ;;  %s1987_s23 = scalar_lea.vmem %s2070_s4, %s1435_s20 }
   0xf   : > { %v267_v8 = vld [vmem:[%s1571_s27 + $0x78] sm:$0xff]  ;;  %v266_v9 = vld [vmem:[%s1571_s27 + $0x70] sm:$0xff]  ;;  %v265_v10 = vld [vmem:[%s1571_s27 + $0x68] sm:$0xff] }
  0x10   : > { %v1566_v7 = vsub.f32 %v270_v3, %v1560_v5  ;;  %v1577_v12 = vand.u32 4294901760, %v267_v8  ;;  %v1579_v13 = vand.u32 4294901760, %v266_v9  ;;  %v1581_v14 = vand.u32 4294901760, %v265_v10  ;;  %v264_v15 = vld [vmem:[%s1571_s27 + $0x60] sm:$0xff]  ;;  %v263_v16 = vld [vmem:[%s1571_s27 + $0x58] sm:$0xff]  ;;  %v262_v17 = vld [vmem:[%s1571_s27 + $0x50] sm:$0xff] }
  0x11   : > { %v1587_v18 = vsub.f32 %v273_v4, %v1562_v6  ;;  %v1589_v19 = vand.u32 4294901760, %v264_v15  ;;  %v1591_v20 = vand.u32 4294901760, %v263_v16  ;;  %v1593_v21 = vand.u32 4294901760, %v262_v17  ;;  %v261_v22 = vld [vmem:[%s1571_s27 + $0x48] sm:$0xff]  ;;  %v260_v23 = vld [vmem:[%s1571_s27 + $0x40] sm:$0xff]  ;;  %v259_v24 = vld [vmem:[%s1571_s27 + $0x38] sm:$0xff] }
  0x12   : > { %v358_v11 = vand.u32 4294901760, %v1566_v7  ;;  %292 = vmatprep.subr.mxu0 %v1577_v12  ;;  %v1604_v26 = vand.u32 4294901760, %v261_v22  ;;  %v1606_v27 = vand.u32 4294901760, %v260_v23  ;;  %v1608_v28 = vand.u32 4294901760, %v259_v24  ;;  %v258_v30 = vld [vmem:[%s1571_s27 + $0x30] sm:$0xff]  ;;  %v257_v31 = vld [vmem:[%s1571_s27 + $0x28] sm:$0xff] }
  0x13   : > { %v1611_v29 = vsub.f32 %v267_v8, %v1577_v12  ;;  %v256_v32 = vld [vmem:[%s1571_s27 + $0x20] sm:$0xff]  ;;  %294 = vmatpush1.msra.mxu0 %v1579_v13  ;;  %v1617_v33 = vand.u32 4294901760, %v258_v30  ;;  %v1620_v34 = vsub.f32 %v266_v9, %v1579_v13  ;;  %v1622_v35 = vand.u32 4294901760, %v257_v31  ;;  %v255_v37 = vld [vmem:[%s1571_s27 + $0x18] sm:$0xff]  ;;  %v254_v38 = vld [vmem:[%s1571_s27 + $0x10] sm:$0xff] }
  0x14   : > { %v1601_v25 = vsub.f32 %v1566_v7, %v358_v11  ;;  %v1625_v36 = vsub.f32 %v265_v10, %v1581_v14  ;;  %v1630_v39 = vld [vmem:[%s1571_s27 + $0x8] sm:$0xff]  ;;  %296 = vmatprep.subr.mxu0 %v1581_v14  ;;  %v1634_v41 = vand.u32 4294901760, %v256_v32  ;;  %v1637_v42 = vsub.f32 %v264_v15, %v1589_v19  ;;  %v1650_v48 = vld [vmem:[%s1571_s27] sm:$0xff] }
  0x15   : > { %v396_v40 = vand.u32 4294901760, %v1611_v29  ;;  %v1639_v43 = vand.u32 4294901760, %v255_v37  ;;  %298 = vmatpush1.msra.mxu0 %v1589_v19  ;;  %v402_v44 = vand.u32 4294901760, %v1620_v34  ;;  %v1645_v46 = vsub.f32 %v263_v16, %v1591_v20 }
  0x16   : > { %v408_v45 = vand.u32 4294901760, %v1625_v36  ;;  %v1647_v47 = vand.u32 4294901760, %v254_v38  ;;  %300 = vmatprep.subr.mxu0 %v1591_v20  ;;  %v414_v50 = vand.u32 4294901760, %v1637_v42  ;;  %v1658_v51 = vsub.f32 %v262_v17, %v1593_v21 }
  0x17   : > { %v397_v49 = vsub.f32 %v1611_v29, %v396_v40  ;;  %v1661_v52 = vand.u32 4294901760, %v1630_v39  ;;  %302 = vmatpush1.msra.mxu0 %v1593_v21  ;;  %v403_v53 = vsub.f32 %v1620_v34, %v402_v44  ;;  %v420_v55 = vand.u32 4294901760, %v1645_v46 }
  0x18   : > { %v409_v54 = vsub.f32 %v1625_v36, %v408_v45  ;;  %v1672_v56 = vsub.f32 %v261_v22, %v1604_v26  ;;  %304 = vmatprep.subr.mxu0 %v1604_v26  ;;  %v415_v58 = vsub.f32 %v1637_v42, %v414_v50  ;;  %v426_v59 = vand.u32 4294901760, %v1658_v51 }
  0x19   : > { %v398_v57 = vand.u32 4294901760, %v397_v49  ;;  %v1680_v60 = vand.u32 4294901760, %v1650_v48  ;;  %306 = vmatpush1.msra.mxu0 %v1606_v27  ;;  %v404_v61 = vand.u32 4294901760, %v403_v53  ;;  %v421_v63 = vsub.f32 %v1645_v46, %v420_v55 }
  0x1a   : > { %v410_v62 = vand.u32 4294901760, %v409_v54  ;;  %v432_v0 = vand.u32 4294901760, %v1672_v56  ;;  %308 = vmatprep.subr.mxu0 %v1608_v28  ;;  %v416_v1 = vand.u32 4294901760, %v415_v58  ;;  %v427_v3 = vsub.f32 %v1658_v51, %v426_v59 }
  0x1b   : > { %399 = vmatprep.subr.mxu1 %v398_v57  ;;  %v1692_v4 = vsub.f32 %v260_v23, %v1606_v27  ;;  %v1695_v8 = vsub.f32 %v259_v24, %v1608_v28  ;;  %310 = vmatpush1.msra.mxu0 %v1617_v33  ;;  %v422_v9 = vand.u32 4294901760, %v421_v63  ;;  %v360_v15 = vand.u32 4294901760, %v1601_v25 }
  0x1c   : > { %405 = vmatpush1.msra.mxu1 %v404_v61  ;;  %v433_v10 = vsub.f32 %v1672_v56, %v432_v0  ;;  %v1703_v16 = vsub.f32 %v258_v30, %v1617_v33  ;;  %312 = vmatprep.subr.mxu0 %v1622_v35  ;;  %v428_v17 = vand.u32 4294901760, %v427_v3  ;;  %v1709_v24 = vsub.f32 %v257_v31, %v1622_v35 }
  0x1d   : > { %411 = vmatprep.subr.mxu1 %v410_v62  ;;  %v438_v22 = vand.u32 4294901760, %v1692_v4  ;;  %v444_v23 = vand.u32 4294901760, %v1695_v8  ;;  %314 = vmatpush1.msra.mxu0 %v1634_v41  ;;  %v1714_v30 = vsub.f32 %v256_v32, %v1634_v41  ;;  %v1717_v53 = vsub.f32 %v255_v37, %v1639_v43 }
  0x1e   : > { %417 = vmatpush1.msra.mxu1 %v416_v1  ;;  %v434_v49 = vand.u32 4294901760, %v433_v10  ;;  %v450_v25 = vand.u32 4294901760, %v1703_v16  ;;  %316 = vmatprep.subr.mxu0 %v1639_v43  ;;  %v456_v57 = vand.u32 4294901760, %v1709_v24  ;;  %v1728_v58 = vsub.f32 %v254_v38, %v1647_v47 }
  0x1f   : > { %423 = vmatprep.subr.mxu1 %v422_v9  ;;  %v439_v31 = vsub.f32 %v1692_v4, %v438_v22  ;;  %v445_v54 = vsub.f32 %v1695_v8, %v444_v23  ;;  %318 = vmatpush1.msra.mxu0 %v1647_v47  ;;  %v2071_v37 = vand.u32 4294901760, %v1714_v30  ;;  %v2072_v61 = vand.u32 4294901760, %v1717_v53 }
  0x20   : > { %429 = vmatpush1.msra.mxu1 %v428_v17  ;;  %v451_v32 = vsub.f32 %v1703_v16, %v450_v25  ;;  %v1738_v62 = vsub.f32 %v1630_v39, %v1661_v52  ;;  %320 = vmatprep.subr.mxu0 %v1661_v52  ;;  %v457_v1 = vsub.f32 %v1709_v24, %v456_v57  ;;  %v2073_v3 = vand.u32 4294901760, %v1728_v58 }
  0x21   : > { %435 = vmatprep.subr.mxu1 %v434_v49  ;;  %v440_v38 = vand.u32 4294901760, %v439_v31  ;;  %v446_v63 = vand.u32 4294901760, %v445_v54  ;;  %322 = vmatpush1.msra.mxu0 %v1680_v60  ;;  %v463_v10 = vsub.f32 %v1714_v30, %v2071_v37  ;;  %v469_v39 = vsub.f32 %v1717_v53, %v2072_v61 }
  0x22   : > { %v452_v9 = vand.u32 4294901760, %v451_v32  ;;  %v480_v17 = vand.u32 4294901760, %v1738_v62  ;;  %555 = vmatprep.subr.mxu0 %v1611_v29  ;;  %v458_v49 = vand.u32 4294901760, %v457_v1  ;;  %v475_v31 = vsub.f32 %v1728_v58, %v2073_v3  ;;  %361 = vmatmul.mubr.f32.vlgmr.msra.gmra.mxu0 %v360_v15 }
  0x23   : > { %441 = vmatpush1.msra.mxu1 %v440_v38  ;;  %v1759_v54 = vsub.f32 %v1650_v48, %v1680_v60  ;;  %v464_v32 = vand.u32 4294901760, %v463_v10  ;;  %v470_v37 = vand.u32 4294901760, %v469_v39  ;;  %558 = vmatpush1.msra.mxu0 %v1620_v34  ;;  %v369_v3 = vand.u32 4294901760, %v1587_v18 }
  0x24   : > { %447 = vmatprep.subr.mxu1 %v446_v63  ;;  %v481_v61 = vsub.f32 %v1738_v62, %v480_v17  ;;  %v476_v38 = vand.u32 4294901760, %v475_v31  ;;  %561 = vmatprep.subr.mxu0 %v1625_v36 }
  0x25   : > { %453 = vmatpush1.msra.mxu1 %v452_v9  ;;  %v486_v1 = vand.u32 4294901760, %v1759_v54  ;;  %564 = vmatpush1.msra.mxu0 %v1637_v42  ;;  %v370_v9 = vsub.f32 %v1587_v18, %v369_v3 }
  0x26   : > { %459 = vmatprep.subr.mxu1 %v458_v49  ;;  %v482_v48 = vand.u32 4294901760, %v481_v61  ;;  %567 = vmatprep.subr.mxu0 %v1645_v46 }
  0x27   : > { %465 = vmatpush1.msra.mxu1 %v464_v32  ;;  %v487_v15 = vsub.f32 %v1759_v54, %v486_v1  ;;  %570 = vmatpush1.msra.mxu0 %v1658_v51 }
  0x28   : > { %471 = vmatprep.subr.mxu1 %v470_v37  ;;  %573 = vmatprep.subr.mxu0 %v1672_v56  ;;  %v371_v37 = vand.u32 4294901760, %v370_v9 }
  0x29   : > { %477 = vmatpush1.msra.mxu1 %v476_v38  ;;  %v488_v63 = vand.u32 4294901760, %v487_v15  ;;  %576 = vmatpush1.msra.mxu0 %v1692_v4 }
  0x2a   : > { %483 = vmatprep.subr.mxu1 %v482_v48  ;;  %579 = vmatprep.subr.mxu0 %v1695_v8 }
  0x2b   : > { %489 = vmatpush1.msra.mxu1 %v488_v63  ;;  %582 = vmatpush1.msra.mxu0 %v1703_v16 }
  0x2c   : > { %524 = vmatmul.mubr.f32.vlgmr.msra.gmra.mxu1 %v1560_v5  ;;  %667 = vmatprep.subr.mxu1 %v1577_v12 }
  0x2d   : > { %669 = vmatpush1.msra.mxu1 %v1579_v13  ;;  %585 = vmatprep.subr.mxu0 %v1709_v24 }
  0x2e   : > { %671 = vmatprep.subr.mxu1 %v1581_v14  ;;  %366 = vmatprep.mubr.f32.mxu0 %v1494_v2 }
  0x2f   : > { %588 = vmatpush1.msra.mxu0 %v1714_v30  ;;  %673 = vmatpush1.msra.mxu1 %v1589_v19 }
  0x30   : > { %372 = vmatmul.mubr.f32.gmra.mxu0 %v371_v37  ;;  %591 = vmatprep.subr.mxu0 %v1717_v53 }
  0x31   : > { %675 = vmatprep.subr.mxu1 %v1591_v20  ;;  %594 = vmatpush1.msra.mxu0 %v1728_v58 }
  0x32   : > { %677 = vmatpush1.msra.mxu1 %v1593_v21  ;;  %597 = vmatprep.subr.mxu0 %v1738_v62 }
  0x33   : > { %679 = vmatprep.subr.mxu1 %v1604_v26  ;;  %600 = vmatpush1.msra.mxu0 %v1759_v54 }
  0x34   : > { %633 = vmatprep.mubr.f32.mxu0 %v1494_v2  ;;  %681 = vmatpush1.msra.mxu1 %v1606_v27 }
  0x35   : > { %529 = vmatprep.mubr.f32.mxu1 %v1494_v2  ;;  %636 = vmatmul.mubr.f32.vlgmr.msra.gmra.mxu0 %v1566_v7  ;;  %v2074_v7 = vand.u32 4294901760, %v1714_v30 }
  0x36   : > { %683 = vmatprep.subr.mxu1 %v1608_v28  ;;  %768 = vmatprep.subr.mxu0 %v396_v40 }
  0x37   : > { %531 = vmatmul.mubr.f32.gmra.mxu1 %v1562_v6  ;;  %772 = vmatpush1.msra.mxu0 %v402_v44 }
  0x38   : > { %685 = vmatpush1.msra.mxu1 %v1617_v33  ;;  %776 = vmatprep.subr.mxu0 %v408_v45 }
  0x39   : > { %687 = vmatprep.subr.mxu1 %v1622_v35  ;;  %641 = vmatprep.mubr.f32.mxu0 %v1494_v2 }
  0x3a   : > { %689 = vmatpush1.msra.mxu1 %v1634_v41  ;;  %780 = vmatpush1.msra.mxu0 %v414_v50 }
  0x3b   : > { %644 = vmatmul.mubr.f32.gmra.mxu0 %v1587_v18  ;;  %691 = vmatprep.subr.mxu1 %v1639_v43 }
  0x3c   : > { %784 = vmatprep.subr.mxu0 %v420_v55  ;;  %693 = vmatpush1.msra.mxu1 %v1647_v47 }
  0x3d   : > { %788 = vmatpush1.msra.mxu0 %v426_v59  ;;  %695 = vmatprep.subr.mxu1 %v1661_v52 }
  0x3e   : > { %792 = vmatprep.subr.mxu0 %v432_v0  ;;  %697 = vmatpush1.msra.mxu1 %v1680_v60 }
  0x3f   : > { %730 = vmatprep.mubr.f32.mxu1 %v1494_v2  ;;  %796 = vmatpush1.msra.mxu0 %v438_v22 }
  0x40   : > { %734 = vmatmul.mubr.f32.vlgmr.msra.gmra.mxu1 %v358_v11  ;;  %800 = vmatprep.subr.mxu0 %v444_v23  ;;  %v2075_v11 = vand.u32 4294901760, %v1717_v53 }
  0x41   : > { %893 = vmatprep.subr.mxu1 %v1577_v12  ;;  %804 = vmatpush1.msra.mxu0 %v450_v25  ;;  %v2076_v12 = vand.u32 4294901760, %v1728_v58 }
  0x42   : > { %895 = vmatpush1.msra.mxu1 %v1579_v13  ;;  %808 = vmatprep.subr.mxu0 %v456_v57 }
  0x43   : > { %897 = vmatprep.subr.mxu1 %v1581_v14  ;;  %739 = vmatprep.mubr.f32.mxu1 %v1494_v2 }
  0x44   : > { %812 = vmatpush1.msra.mxu0 %v2074_v7  ;;  %899 = vmatpush1.msra.mxu1 %v1589_v19 }
  0x45   : > { %743 = vmatmul.mubr.f32.gmra.mxu1 %v369_v3  ;;  %816 = vmatprep.subr.mxu0 %v2075_v11 }
  0x46   : > { %901 = vmatprep.subr.mxu1 %v1591_v20  ;;  %820 = vmatpush1.msra.mxu0 %v2076_v12 }
  0x47   : > { %903 = vmatpush1.msra.mxu1 %v1593_v21  ;;  %824 = vmatprep.subr.mxu0 %v480_v17 }
  0x48   : > { %905 = vmatprep.subr.mxu1 %v1604_v26  ;;  %828 = vmatpush1.msra.mxu0 %v486_v1 }
  0x49   : > { %861 = vmatprep.mubr.f32.mxu0 %v1494_v2  ;;  %907 = vmatpush1.msra.mxu1 %v1606_v27 }
  0x4a   : > { %863 = vmatmul.mubr.f32.vlgmr.msra.gmra.mxu0 %v1560_v5  ;;  %909 = vmatprep.subr.mxu1 %v1608_v28 }
  0x4b   : > { %911 = vmatpush1.msra.mxu1 %v1617_v33  ;;  %868 = vmatprep.mubr.f32.mxu0 %v1494_v2 }
  0x4c   : > { %913 = vmatprep.subr.mxu1 %v1622_v35  ;;  %956 = vmatprep.mubr.f32.mxu1 %v1494_v2 }
  0x4d   : > { %915 = vmatpush1.msra.mxu1 %v1634_v41 }
  0x4e   : > { %870 = vmatmul.mubr.f32.gmra.mxu0 %v1562_v6  ;;  %917 = vmatprep.subr.mxu1 %v1639_v43 }
  0x4f   : > { %919 = vmatpush1.msra.mxu1 %v1647_v47 }
  0x50   : > { %921 = vmatprep.subr.mxu1 %v1661_v52 }
  0x51   : > { %923 = vmatpush1.msra.mxu1 %v1680_v60 }
  0x52   : > { %958 = vmatmul.mubr.f32.vlgmr.msra.gmra.mxu1 %v1560_v5 }
  0x53   : > { %963 = vmatprep.mubr.f32.mxu1 %v1494_v2 }
  0x56   : > { %965 = vmatmul.mubr.f32.gmra.mxu1 %v1562_v6 }
  0xe2   : > { %v362_v13 = vpop.f32.mrf.mxu0 }
  0xe4   : > { %v364_v14 = vpop.f32.mrf.mxu0 }
  0xec   : > { %v525_v19 = vpop.f32.mrf.mxu1 }
  0xed   : > { %v526_v40 = vadd.f32 %v525_v19, %v362_v13  ;;  %v985_v13 = vlaneseq }
  0xee   : > { %v527_v21 = vpop.f32.mrf.mxu1 }
  0xef   : > { %v528_v2 = vadd.f32 %v527_v21, %v364_v14  ;;  %v1906_v14 = vshrl.u32 %v985_v13, 7  ;;  %v1909_v19 = vand.u32 127, %v985_v13  ;;  %vm1990_vm6 = vcmp.lt.s32.totalorder %v985_v13, 256 }
  0xf0   : > { %v373_v18 = vpop.f32.mrf.mxu0 }
  0xf1   : > { %v1912_v21 = vsub.s32 0, %v1906_v14  ;;  %vm987_vm1 = vcmp.lt.s32.totalorder %v1909_v19, 17  ;;  %vm1028_vm2 = vcmp.lt.s32.totalorder %v1909_v19, 16  ;;  %vm1101_vm3 = vcmp.lt.s32.totalorder %v1909_v19, 15 }
  0xf2   : > { %v375_v20 = vpop.f32.mrf.mxu0  ;;  %vm1043_vm4 = vcmp.lt.s32.totalorder %v1909_v19, 1  ;;  %vm1135_vm5 = vcmp.lt.s32.totalorder %v1909_v19, 127  ;;  %vm1188_vm7 = vcmp.lt.s32.totalorder %v1909_v19, 113  ;;  %vm1216_vm8 = vcmp.lt.s32.totalorder %v1909_v19, 112 }
  0xf3   : > { %vm1293_vm9 = vcmp.lt.s32.totalorder %v1909_v19, 111 }
  0xf5   : > { %v637_v26 = vpop.f32.mrf.mxu0 }
  0xf6   : > { %v638_v42 = vadd.f32 %v637_v26, %v526_v40  ;;  %v1915_v26 = vsub.s32 1, %v1906_v14 }
  0xf7   : > { %v532_v27 = vpop.f32.mrf.mxu1  ;;  %v639_v28 = vpop.f32.mrf.mxu0 }
  0xf8   : > { %v640_v6 = vadd.f32 %v639_v28, %v528_v2  ;;  %v533_v16 = vadd.f32 %v532_v27, %v373_v18  ;;  %v971_v27 = vld [vmem:[%s2068_s2] ss:$4 sm:$0x3] }
  0xf9   : > { %v534_v29 = vpop.f32.mrf.mxu1 }
  0xfa   : > { %v535_v23 = vadd.f32 %v534_v29, %v375_v20  ;;  %v1427_v29 = vld [vmem:[%s2068_s2 + $0x2] ss:$4 sm:$0x3] }
  0xfb   : > { %v645_v34 = vpop.f32.mrf.mxu0  ;;  %v1932_v2 = vrot.slane %v1427_v29, %v1912_v21 }
  0xfc   : > { %v646_v30 = vadd.f32 %v645_v34, %v533_v16  ;;  %v998_v34 = vrot.slane %v971_v27, %v1915_v26 }
  0xfd   : > { %v647_v36 = vpop.f32.mrf.mxu0 }
  0xfe   : > { %v648_v58 = vadd.f32 %v647_v36, %v535_v23 }
 0x100   : > { %v735_v33 = vpop.f32.mrf.mxu1 }
 0x101   : > { %v736_v43 = vadd.f32 %v735_v33, %v638_v42  ;;  %v994_v33 = vrot.slane %v971_v27, %v1912_v21  ;;  %v1935_v42 = vrot.slane %v1427_v29, %v1915_v26 }
 0x102   : > { %v737_v35 = vpop.f32.mrf.mxu1 }
 0x103   : > { %v738_v46 = vadd.f32 %v737_v35, %v640_v6 }
 0x105   : > { %v744_v5 = vpop.f32.mrf.mxu1 }
 0x106   : > { %v745_v61 = vadd.f32 %v744_v5, %v646_v30 }
 0x107   : > { %v746_v44 = vpop.f32.mrf.mxu1 }
 0x108   : > { %v747_v10 = vadd.f32 %v746_v44, %v648_v58 }
 0x10a   : > { %v864_v41 = vpop.f32.mrf.mxu0 }
 0x10b   : > { %v865_v47 = vadd.f32 %v864_v41, %v736_v43  ;;  %v1428_v41 = vld [vmem:[%s2068_s2 + $0x3] ss:$4 sm:$0x3] }
 0x10c   : > { %v866_v45 = vpop.f32.mrf.mxu0 }
 0x10d   : > { %v867_v51 = vadd.f32 %v866_v45, %v738_v46 }
 0x10e   : > { %v871_v25 = vpop.f32.mrf.mxu0 }
 0x10f   : > { %v872_v39 = vadd.f32 %v871_v25, %v745_v61  ;;  %v1955_v61 = vstv %s978_s14 }
 0x110   : > { %v873_v3 = vpop.f32.mrf.mxu0 }
 0x111   : > { %v874_v31 = vadd.f32 %v873_v3, %v747_v10 }
 0x112   : > { %v959_v50 = vpop.f32.mrf.mxu1 }
 0x113   : > { %v1873_v52 = vadd.f32 %v959_v50, %v865_v47  ;;  %v1942_v47 = vrot.slane %v1428_v41, %v1912_v21  ;;  %v1945_v50 = vrot.slane %v1428_v41, %v1915_v26 }
 0x114   : > { %v961_v55 = vpop.f32.mrf.mxu1 }
 0x115   : > { %v1875_v56 = vadd.f32 %v961_v55, %v867_v51  ;;  %981 = vrot.lane.b32.xlu0 %v1873_v52, %s1495_s28  ;;  %v1079_v59 = vrot.slane %v1873_v52, 4  ;;  %v1093_v0 = vrot.slane %v1873_v52, 5  ;;  %v1020_v8 = vrot.slane %v1873_v52, 1 }
 0x116   : > { %v1035_v24 = vrot.slane %v1873_v52, 2  ;;  %v966_v57 = vpop.f32.mrf.mxu1  ;;  %v1127_v62 = vrot.slane %v1873_v52, 7  ;;  %v1121_v27 = vrot.slane %v1873_v52, 6 }
 0x117   : > { %1083 = vrot.lane.b32.xlu1 %v1079_v59, %s1496_s29  ;;  %v1080_v60 = vrot.slane %v1875_v56, 4  ;;  %v1094_v4 = vrot.slane %v1875_v56, 5  ;;  %v1021_v22 = vrot.slane %v1875_v56, 1  ;;  %v1036_v53 = vrot.slane %v1875_v56, 2 }
 0x118   : > { %v1128_v17 = vrot.slane %v1875_v56, 7  ;;  %v968_v49 = vpop.f32.mrf.mxu1  ;;  %v1889_v54 = vadd.f32 %v966_v57, %v872_v39  ;;  %v1051_v29 = vrot.slane %v1875_v56, 3 }
 0x119   : > { %983 = vrot.lane.b32.xlu0 %v1875_v56, %s1495_s28  ;;  %v1891_v32 = vadd.f32 %v968_v49, %v874_v31 }
 0x11a   : > { %v1245_v38 = vrot.slane %v1889_v54, 5  ;;  %v1180_v48 = vrot.slane %v1889_v54, 2  ;;  %v1265_v63 = vrot.slane %v1889_v54, 6  ;;  %v1285_v37 = vrot.slane %v1889_v54, 7 }
 0x11b   : > { %1085 = vrot.lane.b32.xlu1 %v1080_v60, %s1496_s29  ;;  %v1246_v1 = vrot.slane %v1891_v32, 5  ;;  %v1181_v15 = vrot.slane %v1891_v32, 2  ;;  %v1266_v9 = vrot.slane %v1891_v32, 6  ;;  %v1286_v7 = vrot.slane %v1891_v32, 7 }
 0x11c   : > { %v1208_v11 = vrot.slane %v1889_v54, 3  ;;  %v1209_v12 = vrot.slane %v1891_v32, 3 }
 0x11d   : > { %1097 = vrot.lane.b32.xlu0 %v1093_v0, %s1497_s30 }
 0x11f   : > { %1099 = vrot.lane.b32.xlu1 %v1094_v4, %s1497_s30  ;;  %v1503_v4 = vmov 1966171168  }
 0x121   : > { %1024 = vrot.lane.b32.xlu0 %v1020_v8, %s1496_s29  ;;  %v1060_v8 = vunpack.c.l.s4 %v1503_v4 }
 0x123   : > { %1026 = vrot.lane.b32.xlu1 %v1021_v22, %s1496_s29  ;;  %v1061_v39 = vunpack.c.0.s8 %v1060_v8 }
 0x125   : > { %1039 = vrot.lane.b32.xlu0 %v1035_v24, %s1498_s5 }
 0x127   : > { %1041 = vrot.lane.b32.xlu1 %v1036_v53, %s1498_s5 }
 0x129   : > { %1131 = vrot.lane.b32.xlu0 %v1127_v62, %s1499_s6 }
 0x12b   : > { %1133 = vrot.lane.b32.xlu1 %v1128_v17, %s1499_s6 }
 0x12d   : > { %1162 = vrot.lane.b32.xlu0 %v1889_v54, %s1498_s5 }
 0x12f   : > { %1164 = vrot.lane.b32.xlu1 %v1891_v32, %s1498_s5 }
 0x131   : > { %1249 = vrot.lane.b32.xlu0 %v1245_v38, %s1499_s6 }
 0x133   : > { %1251 = vrot.lane.b32.xlu1 %v1246_v1, %s1499_s6 }
 0x135   : > { %1184 = vrot.lane.b32.xlu0 %v1180_v48, %s1500_s7 }
 0x137   : > { %1186 = vrot.lane.b32.xlu1 %v1181_v15, %s1500_s7 }
 0x139   : > { %1269 = vrot.lane.b32.xlu0 %v1265_v63, %s1501_s8 }
 0x13b   : > { %1271 = vrot.lane.b32.xlu1 %v1266_v9, %s1501_s8 }
 0x13d   : > { %1289 = vrot.lane.b32.xlu0 %v1285_v37, %s1502_s9 }
 0x13f   : > { %1291 = vrot.lane.b32.xlu1 %v1286_v7, %s1502_s9 }
 0x141   : > { %1212 = vrot.lane.b32.xlu0 %v1208_v11, %s1501_s8 }
 0x143   : > { %1214 = vrot.lane.b32.xlu1 %v1209_v12, %s1501_s8 }
 0x187   : > { %v982_v18 = vpop.permute.xlu0 %981 }
 0x189   : > { %v1084_v20 = vpop.permute.xlu1 %1083 }
 0x18b   : > { %v984_v28 = vpop.permute.xlu0 %983 }
 0x18c   : > { %v988_v36 = vsel %vm987_vm1, %v982_v18, %v984_v28  ;;  %v989_v40 = vsel %vm987_vm1, %v984_v28, %v982_v18  ;;  %v1122_v28 = vrot.slane %v1875_v56, 6 }
 0x18d   : > { %v1086_v35 = vpop.permute.xlu1 %1085  ;;  %v1001_v6 = vmul.f32 %v994_v33, %v989_v40  ;;  %v1002_v43 = vmul.f32 %v998_v34, %v988_v36 }
 0x18e   : > { %v1087_v44 = vsel %vm1028_vm2, %v1084_v20, %v1086_v35  ;;  %v1088_v45 = vsel %vm1028_vm2, %v1086_v35, %v1084_v20  ;;  %v1970_v20 = vsub.s32 %v1061_v39, %v1906_v14  ;;  %v1050_v35 = vrot.slane %v1873_v52, 3 }
 0x18f   : > { %v1098_v5 = vpop.permute.xlu0 %1097  ;;  %v1089_v16 = vmul.f32 %v1088_v45, %v994_v33  ;;  %v1090_v22 = vmul.f32 %v1087_v44, %v998_v34  ;;  %v1014_v23 = vmul.f32 %v1932_v2, %v1001_v6  ;;  %v1015_v24 = vmul.f32 %v1935_v42, %v1002_v43 }
 0x191   : > { %v1100_v46 = vpop.permute.xlu1 %1099  ;;  %v1091_v17 = vadd.f32 %v1089_v16, %v1955_v61  ;;  %v1092_v49 = vadd.f32 %v1090_v22, %v1955_v61  ;;  %v1016_v31 = vadd.f32 %v1014_v23, %v1955_v61  ;;  %v1017_v38 = vadd.f32 %v1015_v24, %v1955_v61  ;;  %v1426_v23 = vld [vmem:[%s2068_s2 + $0x1] ss:$4 sm:$0x3] }
 0x192   : > { %v1102_v51 = vsel %vm1101_vm3, %v1098_v5, %v1100_v46  ;;  %v1103_v55 = vsel %vm1101_vm3, %v1100_v46, %v1098_v5 }
 0x193   : > { %v1104_v59 = vmul.f32 %v1103_v55, %v994_v33  ;;  %v1105_v60 = vmul.f32 %v1102_v51, %v998_v34  ;;  %v1025_v0 = vpop.permute.xlu0 %1024 }
 0x195   : > { %v1027_v25 = vpop.permute.xlu1 %1026  ;;  %v1117_v30 = vmul.f32 %v1942_v47, %v1104_v59  ;;  %v1118_v53 = vmul.f32 %v1945_v50, %v1105_v60 }
 0x196   : > { %v1029_v57 = vsel %vm1028_vm2, %v1025_v0, %v1027_v25  ;;  %v1030_v58 = vsel %vm1028_vm2, %v1027_v25, %v1025_v0 }
 0x197   : > { %v1031_v62 = vmul.f32 %v1030_v58, %v994_v33  ;;  %v1032_v3 = vmul.f32 %v1029_v57, %v998_v34  ;;  %v1040_v10 = vpop.permute.xlu0 %1039  ;;  %v1119_v48 = vadd.f32 %v1117_v30, %v1091_v17  ;;  %v1120_v15 = vadd.f32 %v1118_v53, %v1092_v49 }
 0x198   : > { %v1195_v58 = vrot.slane %v1426_v23, %v1912_v21 }
 0x199   : > { %v1042_v1 = vpop.permute.xlu1 %1041  ;;  %v1033_v37 = vadd.f32 %v1031_v62, %v1016_v31  ;;  %v1034_v7 = vadd.f32 %v1032_v3, %v1017_v38  ;;  %v1125_v40 = vadd.f32 %v1121_v27, %v1119_v48  ;;  %v1126_v5 = vadd.f32 %v1122_v28, %v1120_v15 }
 0x19a   : > { %v1044_v63 = vsel %vm1043_vm4, %v1040_v10, %v1042_v1  ;;  %v1045_v9 = vsel %vm1043_vm4, %v1042_v1, %v1040_v10  ;;  %v1199_v62 = vrot.slane %v1426_v23, %v1915_v26  ;;  %v1175_v27 = vrot.slane %v1891_v32, 1 }
 0x19b   : > { %v1046_v11 = vmul.f32 %v1045_v9, %v1932_v2  ;;  %v1047_v12 = vmul.f32 %v1044_v63, %v1935_v42  ;;  %v1132_v18 = vpop.permute.xlu0 %1131 }
 0x19d   : > { %v1048_v33 = vadd.f32 %v1046_v11, %v1033_v37  ;;  %v1049_v34 = vadd.f32 %v1047_v12, %v1034_v7  ;;  %v1134_v36 = vpop.permute.xlu1 %1133 }
 0x19e   : > { %v1136_v41 = vsel %vm1135_vm5, %v1132_v18, %v1134_v36  ;;  %v1137_v14 = vsel %vm1135_vm5, %v1134_v36, %v1132_v18  ;;  %v1174_v18 = vrot.slane %v1889_v54, 1 }
 0x19f   : > { %v1054_v6 = vadd.f32 %v1050_v35, %v1048_v33  ;;  %v1055_v43 = vadd.f32 %v1051_v29, %v1049_v34  ;;  %v1138_v44 = vmul.f32 %v1136_v41, %v1942_v47  ;;  %v1139_v45 = vmul.f32 %v1137_v14, %v1945_v50  ;;  %v1163_v56 = vpop.permute.xlu0 %1162 }
 0x1a0   : > { %v1243_v33 = vadd.f32 %v1955_v61, %v1889_v54  ;;  %v1244_v34 = vadd.f32 %v1955_v61, %v1891_v32 }
 0x1a1   : > { %v1058_v46 = vcombine.low %v1054_v6, %v1055_v43  ;;  %v1140_v51 = vadd.f32 %v1138_v44, %v1125_v40  ;;  %v1141_v52 = vadd.f32 %v1139_v45, %v1126_v5  ;;  %v1165_v55 = vpop.permute.xlu1 %1164 }
 0x1a2   : > { %v1166_v13 = vsel %vm1043_vm4, %v1163_v56, %v1165_v55  ;;  %v1167_v30 = vsel %vm1043_vm4, %v1165_v55, %v1163_v56 }
 0x1a3   : > { %v1065_v59 = vrot.slane %v1058_v46, %v1970_v20  ;;  %v1144_v60 = vcombine.low %v1140_v51, %v1141_v52  ;;  %v1250_v0 = vpop.permute.xlu0 %1249  ;;  %v1168_v17 = vmul.f32 %v1167_v30, %v1932_v2  ;;  %v1169_v49 = vmul.f32 %v1166_v13, %v1935_v42 }
 0x1a5   : > { %v1072_v8 = vrot.slane %v1065_v59, %v1970_v20  ;;  %v1151_v16 = vrot.slane %v1144_v60, %v1970_v20  ;;  %v1252_v22 = vpop.permute.xlu1 %1251  ;;  %v1170_v9 = vadd.f32 %v1168_v17, %v1955_v61  ;;  %v1171_v37 = vadd.f32 %v1169_v49, %v1955_v61 }
 0x1a6   : > { %v1253_v53 = vsel %vm1135_vm5, %v1250_v0, %v1252_v22  ;;  %v1254_v57 = vsel %vm1135_vm5, %v1252_v22, %v1250_v0 }
 0x1a7   : > { %1078 = vst.msk [vmem:[%s1987_s23] ss:$4 sm:$0x3] %vm1990_vm6, %v1072_v8  ;;  %v1158_v24 = vrot.slane %v1151_v16, %v1970_v20  ;;  %v1185_v25 = vpop.permute.xlu0 %1184  ;;  %v1255_v38 = vmul.f32 %v1253_v53, %v1942_v47  ;;  %v1256_v1 = vmul.f32 %v1254_v57, %v1945_v50  ;;  %v1178_v43 = vadd.f32 %v1174_v18, %v1170_v9 }
 0x1a8   : > { %v1179_v44 = vadd.f32 %v1175_v27, %v1171_v37 }
 0x1a9   : > { %1429 = vst.msk [vmem:[%s1987_s23 + $0x1] ss:$4 sm:$0x3] %vm1990_vm6, %v1158_v24  ;;  %v1187_v3 = vpop.permute.xlu1 %1186  ;;  %v1259_v28 = vrot.slane %v1255_v38, 4  ;;  %v1260_v29 = vrot.slane %v1256_v1, 4 }
 0x1aa   : > { %v1189_v10 = vsel %vm1188_vm7, %v1185_v25, %v1187_v3  ;;  %v1190_v39 = vsel %vm1188_vm7, %v1187_v3, %v1185_v25 }
 0x1ab   : > { %v1270_v31 = vpop.permute.xlu0 %1269  ;;  %v1202_v48 = vmul.f32 %v1195_v58, %v1189_v10  ;;  %v1203_v15 = vmul.f32 %v1199_v62, %v1190_v39  ;;  %v1263_v56 = vadd.f32 %v1259_v28, %v1243_v33  ;;  %v1264_v46 = vadd.f32 %v1260_v29, %v1244_v34 }
 0x1ad   : > { %v1272_v63 = vpop.permute.xlu1 %1271  ;;  %v1204_v35 = vmul.f32 %v1202_v48, %v1932_v2  ;;  %v1205_v36 = vmul.f32 %v1203_v15, %v1935_v42 }
 0x1ae   : > { %v1273_v21 = vsel %vm1216_vm8, %v1270_v31, %v1272_v63  ;;  %v1274_v26 = vsel %vm1216_vm8, %v1272_v63, %v1270_v31 }
 0x1af   : > { %v1275_v7 = vmul.f32 %v1273_v21, %v1195_v58  ;;  %v1276_v11 = vmul.f32 %v1274_v26, %v1199_v62  ;;  %v1290_v12 = vpop.permute.xlu0 %1289  ;;  %v1206_v61 = vadd.f32 %v1204_v35, %v1178_v43  ;;  %v1207_v52 = vadd.f32 %v1205_v36, %v1179_v44 }
 0x1b1   : > { %v1292_v40 = vpop.permute.xlu1 %1291  ;;  %v1279_v5 = vrot.slane %v1275_v7, 4  ;;  %v1280_v41 = vrot.slane %v1276_v11, 4 }
 0x1b2   : > { %v1294_v14 = vsel %vm1293_vm9, %v1290_v12, %v1292_v40  ;;  %v1295_v6 = vsel %vm1293_vm9, %v1292_v40, %v1290_v12 }
 0x1b3   : > { %v1296_v45 = vmul.f32 %v1294_v14, %v1195_v58  ;;  %v1297_v54 = vmul.f32 %v1295_v6, %v1199_v62  ;;  %v1213_v42 = vpop.permute.xlu0 %1212  ;;  %v1283_v55 = vadd.f32 %v1279_v5, %v1263_v56  ;;  %v1284_v59 = vadd.f32 %v1280_v41, %v1264_v46 }
 0x1b5   : > { %v1298_v32 = vmul.f32 %v1296_v45, %v1942_v47  ;;  %v1299_v2 = vmul.f32 %v1297_v54, %v1945_v50  ;;  %v1215_v51 = vpop.permute.xlu1 %1214 }
 0x1b6   : > { %v1217_v60 = vsel %vm1216_vm8, %v1213_v42, %v1215_v51  ;;  %v1218_v0 = vsel %vm1216_vm8, %v1215_v51, %v1213_v42 }
 0x1b7   : > { %v1302_v8 = vrot.slane %v1298_v32, 4  ;;  %v1303_v16 = vrot.slane %v1299_v2, 4  ;;  %v1219_v22 = vmul.f32 %v1217_v60, %v1195_v58  ;;  %v1220_v47 = vmul.f32 %v1218_v0, %v1199_v62 }
 0x1b9   : > { %v1306_v23 = vadd.f32 %v1302_v8, %v1283_v55  ;;  %v1307_v50 = vadd.f32 %v1303_v16, %v1284_v59  ;;  %v1221_v24 = vadd.f32 %v1219_v22, %v1206_v61  ;;  %v1222_v25 = vadd.f32 %v1220_v47, %v1207_v52 }
 0x1bb   : > { %v1310_v13 = vcombine.high %v1306_v23, %v1307_v50  ;;  %v1225_v30 = vcombine.low %v1221_v24, %v1222_v25 }
 0x1bd   : > { %v1317_v53 = vrot.slane %v1310_v13, %v1970_v20  ;;  %v1232_v57 = vrot.slane %v1225_v30, %v1970_v20 }
 0x1bf   : > { %v1324_v3 = vrot.slane %v1317_v53, %v1970_v20  ;;  %v1239_v19 = vrot.slane %v1232_v57, %v1970_v20 }
 0x1c1   : > { %1431 = vst.msk [vmem:[%s1987_s23 + $0x3] ss:$4 sm:$0x3] %vm1990_vm6, %v1324_v3  ;;  %1430 = vst.msk [vmem:[%s1987_s23 + $0x2] ss:$4 sm:$0x3] %vm1990_vm6, %v1239_v19 }
 0x1c2 PF: > { %s15_s19 = sadd.s32 1, %s1492_s19   ;;  %s2079_s17 = smov %s1488_s18 }
 0x1c3   : > { %p12_p5 = scmp.ge.s32.totalorder %s15_s19, 4   ;;  %s2080_s18 = smov %s2082_s3 }
 0x1c5   :  { %14 = sbr.rel (!%p12_p5) target bundleno = 2 (0x2), region = 75 }

</bundles_post_ra>
